<compile_context>
chip_gen: v5e
topology: v5e:2x2
jax: 0.10.0
libtpu: 0.0.40
codegen_flags: <defaults>
</compile_context>

<pallas_src>
import functools

import jax
import jax.numpy as jnp
from jax.experimental import pallas as pl
from jax.experimental.pallas import tpu as pltpu


def _round_up(n: int, m: int) -> int:
    return ((n + m - 1) // m) * m


# ---------------------------------------------------------------------------
# Kernels
# ---------------------------------------------------------------------------

def _mlp_single_layer_kernel(x_ref, wl_ref, bl_ref, o_ref, *, relu_last: bool):
    """num_layers == 1: one Linear (+optional ReLU), no scratch needed."""
    y = jnp.dot(x_ref[...], wl_ref[...], preferred_element_type=jnp.float32)
    y = y + bl_ref[...]
    if relu_last:
        y = jnp.maximum(y, 0.0)
    o_ref[...] = y.astype(o_ref.dtype)


def _mlp_fused_kernel(x_ref, wh_ref, bh_ref, wl_ref, bl_ref, o_ref, act_ref,
                      *, num_layers: int, relu_last: bool):
    """num_layers >= 2.  Grid = (m_tiles, num_layers); l = layer index.

    x_ref  : (tm, Dpad)        bf16  input tile (fetched once per m tile)
    wh_ref : (1, Dpad, Dpad)   bf16  hidden-layer weight block for layer l
                                      (index_map clamps to the last hidden
                                       layer when l == num_layers-1, so no
                                       extra DMA happens on the final step)
    bh_ref : (L-1, 1, Dpad)    f32   all hidden biases (tiny, resident)
    wl_ref : (Dpad, Opad)      bf16  final projection weight (resident)
    bl_ref : (1, Opad)         f32   final projection bias
    o_ref  : (tm, Opad)        f32   output tile (written only at l == last)
    act_ref: (tm, Dpad)        bf16  persistent running activation scratch
    """
    l = pl.program_id(1)
    last = num_layers - 1

    @pl.when(l == 0)
    def _():
        # First hidden layer reads the input tile directly (no act <- x copy).
        y = jnp.dot(x_ref[...], wh_ref[0], preferred_element_type=jnp.float32)
        y = jnp.maximum(y + bh_ref[0], 0.0)
        act_ref[...] = y.astype(act_ref.dtype)

    @pl.when(jnp.logical_and(l > 0, l < last))
    def _():
        # Middle hidden layers chain through the bf16 VMEM activation scratch.
        y = jnp.dot(act_ref[...], wh_ref[0], preferred_element_type=jnp.float32)
        y = jnp.maximum(y + bh_ref[l], 0.0)
        act_ref[...] = y.astype(act_ref.dtype)

    @pl.when(l == last)
    def _():
        # Final projection writes straight to the f32 output tile.
        y = jnp.dot(act_ref[...], wl_ref[...], preferred_element_type=jnp.float32)
        y = y + bl_ref[...]
        if relu_last:
            y = jnp.maximum(y, 0.0)
        o_ref[...] = y.astype(o_ref.dtype)


# ---------------------------------------------------------------------------
# Params (mirrors nn.Linear default init; weights stored pre-transposed [in,out])
# ---------------------------------------------------------------------------

def init_mlp_params(key, inp_dim, out_dim, num_layers=1, bias=True):
    params = []
    dims = [(inp_dim, inp_dim)] * (num_layers - 1) + [(inp_dim, out_dim)]
    for (din, dout) in dims:
        key, kw, kb = jax.random.split(key, 3)
        bound = 1.0 / jnp.sqrt(jnp.float32(din))
        w_t = jax.random.uniform(kw, (din, dout), jnp.float32, -bound, bound)
        if bias:
            b = jax.random.uniform(kb, (1, dout), jnp.float32, -bound, bound)
        else:
            b = jnp.zeros((1, dout), jnp.float32)
        params.append((w_t, b))
    return params


def _prepare_params(params):
    """Pad / stack / cast params ONCE (hoisted out of the forward pass).

    Hidden layers (all inp_dim -> inp_dim) are stacked into one bf16 array
    padded to (Dpad, Dpad); the final projection is padded independently to
    (Dpad, Opad).  Zero-padded feature lanes stay exactly zero through every
    layer (zero weight rows/cols + zero bias), so results are unaffected.
    """
    num_layers = len(params)
    inp_dim = params[0][0].shape[0]
    out_dim = params[-1][0].shape[1]
    din_pad = _round_up(inp_dim, 128)
    dout_pad = _round_up(out_dim, 128)

    w_last_t, b_last = params[-1]
    wl = jnp.zeros((din_pad, dout_pad), jnp.float32)
    wl = wl.at[:inp_dim, :out_dim].set(w_last_t).astype(jnp.bfloat16)
    bl = jnp.zeros((1, dout_pad), jnp.float32).at[:, :out_dim].set(b_last)

    if num_layers > 1:
        nh = num_layers - 1
        wh = jnp.zeros((nh, din_pad, din_pad), jnp.float32)
        bh = jnp.zeros((nh, 1, din_pad), jnp.float32)
        for i, (w_t, b) in enumerate(params[:-1]):
            wh = wh.at[i, :inp_dim, :inp_dim].set(w_t)
            bh = bh.at[i, :, :inp_dim].set(b)
        wh = wh.astype(jnp.bfloat16)
    else:
        wh = None
        bh = None
    return wh, bh, wl, bl, out_dim


# ---------------------------------------------------------------------------
# Forward
# ---------------------------------------------------------------------------

@functools.partial(jax.jit, static_argnames=("out_dim", "relu", "block_m"))
def _mlp_forward(x, wh, bh, wl, bl, *, out_dim, relu=True, block_m=128):
    batch, inp_dim = x.shape
    din_pad, dout_pad = wl.shape
    num_layers = 1 if wh is None else int(wh.shape[0]) + 1

    # Batch tiling: tm multiple of 16 (bf16 sublane tile); m axis is "parallel"
    # so the v7x megacore can shard row tiles across its 2 TensorCores.
    tm = min(block_m, _round_up(batch, 16))
    m_pad = _round_up(batch, tm)
    m_tiles = m_pad // tm

    x_pad = jnp.zeros((m_pad, din_pad), jnp.bfloat16)
    x_pad = x_pad.at[:batch, :inp_dim].set(x.astype(jnp.bfloat16))

    # VMEM budget: double-buffered x/out blocks + double-buffered hidden-W
    # block + resident final projection + biases + bf16 activation scratch.
    vmem_need = (
        2 * tm * din_pad * 2        # x blocks (bf16)
        + 2 * tm * dout_pad * 4     # out blocks (f32)
        + din_pad * dout_pad * 2    # W_last (bf16, resident)
        + dout_pad * 4              # b_last
        + tm * din_pad * 2          # activation scratch (bf16)
    )
    if num_layers > 1:
        vmem_need += 2 * din_pad * din_pad * 2       # hidden-W blocks (bf16)
        vmem_need += (num_layers - 1) * din_pad * 4  # hidden bias stack
    # Cap conservatively under v7x's 64 MiB/TC physical VMEM.
    # TODO(synk): derive the cap per generation via pltpu.get_tpu_info().
    vmem_limit = int(min(max(2 * vmem_need + (4 << 20), 32 << 20), 56 << 20))

    if num_layers == 1:
        out_pad = pl.pallas_call(
            functools.partial(_mlp_single_layer_kernel, relu_last=relu),
            out_shape=jax.ShapeDtypeStruct((m_pad, dout_pad), jnp.float32),
            grid=(m_tiles,),
            in_specs=[
                pl.BlockSpec((tm, din_pad), lambda m: (m, 0)),        # x
                pl.BlockSpec((din_pad, dout_pad), lambda m: (0, 0)),  # W_last
                pl.BlockSpec((1, dout_pad), lambda m: (0, 0)),        # b_last
            ],
            out_specs=pl.BlockSpec((tm, dout_pad), lambda m: (m, 0)),
            compiler_params=pltpu.CompilerParams(
                dimension_semantics=("parallel",),
                vmem_limit_bytes=vmem_limit),
        )(x_pad, wl, bl)
    else:
        nh = num_layers - 1
        out_pad = pl.pallas_call(
            functools.partial(_mlp_fused_kernel, num_layers=num_layers,
                              relu_last=relu),
            out_shape=jax.ShapeDtypeStruct((m_pad, dout_pad), jnp.float32),
            grid=(m_tiles, num_layers),
            in_specs=[
                # Input tile: block index constant in l -> fetched once per m.
                pl.BlockSpec((tm, din_pad), lambda m, l: (m, 0)),
                # Hidden weight for layer l, double-buffered by Pallas; the
                # clamp keeps the index unchanged on the final (projection)
                # step so no extra DMA is issued there.
                pl.BlockSpec((1, din_pad, din_pad),
                             lambda m, l: (jnp.minimum(l, nh - 1), 0, 0)),
                # Small resident tensors.
                pl.BlockSpec((nh, 1, din_pad), lambda m, l: (0, 0, 0)),
                pl.BlockSpec((din_pad, dout_pad), lambda m, l: (0, 0)),
                pl.BlockSpec((1, dout_pad), lambda m, l: (0, 0)),
            ],
            out_specs=pl.BlockSpec((tm, dout_pad), lambda m, l: (m, 0)),
            scratch_shapes=[pltpu.VMEM((tm, din_pad), jnp.bfloat16)],
            compiler_params=pltpu.CompilerParams(
                dimension_semantics=("parallel", "arbitrary"),
                vmem_limit_bytes=vmem_limit),
        )(x_pad, wh, bh, wl, bl)

    return out_pad[:batch, :out_dim]


def build_mlp_forward(params, *, relu=True, block_m=128):
    """Prepare (pad/stack/cast) params once and return a forward callable."""
    wh, bh, wl, bl, out_dim = _prepare_params(params)

    def forward(x):
        return _mlp_forward(x, wh, bh, wl, bl, out_dim=out_dim, relu=relu,
                            block_m=block_m)

    return forward


# ---------------------------------------------------------------------------
# Reference + demo
# ---------------------------------------------------------------------------

def _mlp_reference(x, params, *, relu):
    """Pure-JAX reference with the same bf16-input / f32-accumulate numerics."""
    num_layers = len(params)
    ref = x
    for i, (w_t, b) in enumerate(params):
        a = ref.astype(jnp.bfloat16).astype(jnp.float32)
        w = w_t.astype(jnp.bfloat16).astype(jnp.float32)
        ref = a @ w + b
        if (i < num_layers - 1) or relu:
            ref = jnp.maximum(ref, 0.0)
    return ref


if __name__ == "__main__":
    key = jax.random.PRNGKey(0)
    k_in, k_p1, k_p2, k_p3 = jax.random.split(key, 4)

    batch, inp_dim, out_dim = 8, 32, 16
    x = jax.random.normal(k_in, (batch, inp_dim), jnp.float32)

    # Case 1: num_layers=2, relu=True (hidden Linear+ReLU, final Linear+ReLU).
    params2 = init_mlp_params(k_p1, inp_dim, out_dim, num_layers=2, bias=True)
    out2 = jax.block_until_ready(build_mlp_forward(params2, relu=True)(x))
    ref2 = _mlp_reference(x, params2, relu=True)
    assert out2.shape == (batch, out_dim)
    assert jnp.allclose(out2, ref2, atol=2e-3, rtol=2e-3), (
        f"L2 max abs err = {jnp.max(jnp.abs(out2 - ref2))}")

    # Case 2: num_layers=3, relu=True (exercises the middle-layer branch and
    # dynamic hidden-bias indexing).
    params3 = init_mlp_params(k_p2, inp_dim, out_dim, num_layers=3, bias=True)
    out3 = jax.block_until_ready(build_mlp_forward(params3, relu=True)(x))
    ref3 = _mlp_reference(x, params3, relu=True)
    assert out3.shape == (batch, out_dim)
    assert jnp.allclose(out3, ref3, atol=2e-3, rtol=2e-3), (
        f"L3 max abs err = {jnp.max(jnp.abs(out3 - ref3))}")

    # Case 3: num_layers=1, relu=False (single Linear) — single-layer kernel.
    params1 = init_mlp_params(k_p3, inp_dim, out_dim, num_layers=1, bias=True)
    out1 = jax.block_until_ready(build_mlp_forward(params1, relu=False)(x))
    ref1 = _mlp_reference(x, params1, relu=False)
    assert out1.shape == (batch, out_dim)
    assert jnp.allclose(out1, ref1, atol=2e-3, rtol=2e-3), (
        f"L1 max abs err = {jnp.max(jnp.abs(out1 - ref1))}")

    print("KERNEL_OK")
</pallas_src>

<mosaic_0001>
module attributes {stable_mosaic.version = 11 : i64} {
  func.func @_mlp_fused_kernel(%arg0: i32, %arg1: i32, %arg2: memref<16x128xbf16, #tpu.memory_space<vmem>>, %arg3: memref<1x128x128xbf16, #tpu.memory_space<vmem>>, %arg4: memref<1x1x128xf32, #tpu.memory_space<vmem>>, %arg5: memref<128x128xbf16, #tpu.memory_space<vmem>>, %arg6: memref<1x128xf32, #tpu.memory_space<vmem>>, %arg7: memref<16x128xf32, #tpu.memory_space<vmem>>, %arg8: memref<16x128xbf16, #tpu.memory_space<vmem>>) attributes {dimension_semantics = [#tpu.dimension_semantics<parallel>, #tpu.dimension_semantics<arbitrary>], iteration_bounds = array<i64: 1, 2>, scalar_prefetch = 0 : i64, scratch_operands = 1 : i64, tpu.core_type = #tpu.core_type<tc>, window_params = [{transform_indices = @transform_0, window_bounds = array<i64: 16, 128>}, {transform_indices = @transform_1, window_bounds = array<i64: 1, 128, 128>}, {pipeline_mode = #tpu.pipeline_mode<synchronous>, transform_indices = @transform_2, window_bounds = array<i64: 1, 1, 128>}, {pipeline_mode = #tpu.pipeline_mode<synchronous>, transform_indices = @transform_3, window_bounds = array<i64: 128, 128>}, {pipeline_mode = #tpu.pipeline_mode<synchronous>, transform_indices = @transform_4, window_bounds = array<i64: 1, 128>}, {transform_indices = @transform_5, window_bounds = array<i64: 16, 128>}]} {
    %c0_i32 = arith.constant 0 : i32
    %0 = arith.cmpi eq, %arg1, %c0_i32 : i32
    %1 = arith.extui %0 : i1 to i32
    %c0_i32_0 = arith.constant 0 : i32
    %2 = arith.cmpi ne, %1, %c0_i32_0 : i32
    scf.if %2 {
      %c0 = arith.constant 0 : index
      %c0_5 = arith.constant 0 : index
      %11 = vector.load %arg2[%c0, %c0_5] : memref<16x128xbf16, #tpu.memory_space<vmem>>, vector<16x128xbf16>
      %c0_6 = arith.constant 0 : index
      %c0_7 = arith.constant 0 : index
      %c0_8 = arith.constant 0 : index
      %12 = vector.load %arg3[%c0_6, %c0_7, %c0_8] : memref<1x128x128xbf16, #tpu.memory_space<vmem>>, vector<1x128x128xbf16>
      %13 = vector.shape_cast %12 : vector<1x128x128xbf16> to vector<128x128xbf16>
      %cst = arith.constant dense<0.000000e+00> : vector<16x128xf32>
      %14 = tpu.matmul %11, %13, %cst {dimension_numbers = #tpu.dot_dimension_numbers<[1], [0], [0], [1], [0, 0, 1, 1], [], []>} : vector<16x128xbf16>, vector<128x128xbf16>, vector<16x128xf32> -> vector<16x128xf32>
      %c0_9 = arith.constant 0 : index
      %c0_10 = arith.constant 0 : index
      %c0_11 = arith.constant 0 : index
      %15 = vector.load %arg4[%c0_9, %c0_10, %c0_11] : memref<1x1x128xf32, #tpu.memory_space<vmem>>, vector<1x1x128xf32>
      %16 = vector.shape_cast %15 : vector<1x1x128xf32> to vector<1x128xf32>
      %17 = vector.broadcast %16 : vector<1x128xf32> to vector<16x128xf32>
      %18 = arith.addf %14, %17 : vector<16x128xf32>
      %cst_12 = arith.constant 0.000000e+00 : f32
      %19 = vector.broadcast %cst_12 : f32 to vector<16x128xf32>
      %20 = arith.maximumf %18, %19 : vector<16x128xf32>
      %21 = arith.truncf %20 : vector<16x128xf32> to vector<16x128xbf16>
      %c0_13 = arith.constant 0 : index
      %c0_14 = arith.constant 0 : index
      %22 = vector.load %arg8[%c0_13, %c0_14] : memref<16x128xbf16, #tpu.memory_space<vmem>>, vector<16x128xbf16>
      tpu.vector_store %arg8[%c0_13, %c0_14], %21 {strides = array<i32>} : memref<16x128xbf16, #tpu.memory_space<vmem>>, vector<16x128xbf16>,
    } else {
    }
    %c0_i32_1 = arith.constant 0 : i32
    %3 = arith.cmpi sgt, %arg1, %c0_i32_1 : i32
    %c1_i32 = arith.constant 1 : i32
    %4 = arith.cmpi slt, %arg1, %c1_i32 : i32
    %5 = arith.andi %3, %4 : i1
    %6 = arith.extui %5 : i1 to i32
    %c0_i32_2 = arith.constant 0 : i32
    %7 = arith.cmpi ne, %6, %c0_i32_2 : i32
    scf.if %7 {
      %c0 = arith.constant 0 : index
      %c0_5 = arith.constant 0 : index
      %11 = vector.load %arg8[%c0, %c0_5] : memref<16x128xbf16, #tpu.memory_space<vmem>>, vector<16x128xbf16>
      %c0_6 = arith.constant 0 : index
      %c0_7 = arith.constant 0 : index
      %c0_8 = arith.constant 0 : index
      %12 = vector.load %arg3[%c0_6, %c0_7, %c0_8] : memref<1x128x128xbf16, #tpu.memory_space<vmem>>, vector<1x128x128xbf16>
      %13 = vector.shape_cast %12 : vector<1x128x128xbf16> to vector<128x128xbf16>
      %cst = arith.constant dense<0.000000e+00> : vector<16x128xf32>
      %14 = tpu.matmul %11, %13, %cst {dimension_numbers = #tpu.dot_dimension_numbers<[1], [0], [0], [1], [0, 0, 1, 1], [], []>} : vector<16x128xbf16>, vector<128x128xbf16>, vector<16x128xf32> -> vector<16x128xf32>
      %15 = arith.index_cast %arg1 : i32 to index
      %c0_9 = arith.constant 0 : index
      %c0_10 = arith.constant 0 : index
      %16 = vector.load %arg4[%15, %c0_9, %c0_10] : memref<1x1x128xf32, #tpu.memory_space<vmem>>, vector<1x1x128xf32>
      %17 = vector.shape_cast %16 : vector<1x1x128xf32> to vector<1x128xf32>
      %18 = vector.broadcast %17 : vector<1x128xf32> to vector<16x128xf32>
      %19 = arith.addf %14, %18 : vector<16x128xf32>
      %cst_11 = arith.constant 0.000000e+00 : f32
      %20 = vector.broadcast %cst_11 : f32 to vector<16x128xf32>
      %21 = arith.maximumf %19, %20 : vector<16x128xf32>
      %22 = arith.truncf %21 : vector<16x128xf32> to vector<16x128xbf16>
      %c0_12 = arith.constant 0 : index
      %c0_13 = arith.constant 0 : index
      %23 = vector.load %arg8[%c0_12, %c0_13] : memref<16x128xbf16, #tpu.memory_space<vmem>>, vector<16x128xbf16>
      tpu.vector_store %arg8[%c0_12, %c0_13], %22 {strides = array<i32>} : memref<16x128xbf16, #tpu.memory_space<vmem>>, vector<16x128xbf16>,
    } else {
    }
    %c1_i32_3 = arith.constant 1 : i32
    %8 = arith.cmpi eq, %arg1, %c1_i32_3 : i32
    %9 = arith.extui %8 : i1 to i32
    %c0_i32_4 = arith.constant 0 : i32
    %10 = arith.cmpi ne, %9, %c0_i32_4 : i32
    scf.if %10 {
      %c0 = arith.constant 0 : index
      %c0_5 = arith.constant 0 : index
      %11 = vector.load %arg8[%c0, %c0_5] : memref<16x128xbf16, #tpu.memory_space<vmem>>, vector<16x128xbf16>
      %c0_6 = arith.constant 0 : index
      %c0_7 = arith.constant 0 : index
      %12 = vector.load %arg5[%c0_6, %c0_7] : memref<128x128xbf16, #tpu.memory_space<vmem>>, vector<128x128xbf16>
      %cst = arith.constant dense<0.000000e+00> : vector<16x128xf32>
      %13 = tpu.matmul %11, %12, %cst {dimension_numbers = #tpu.dot_dimension_numbers<[1], [0], [0], [1], [0, 0, 1, 1], [], []>} : vector<16x128xbf16>, vector<128x128xbf16>, vector<16x128xf32> -> vector<16x128xf32>
      %c0_8 = arith.constant 0 : index
      %c0_9 = arith.constant 0 : index
      %14 = vector.load %arg6[%c0_8, %c0_9] : memref<1x128xf32, #tpu.memory_space<vmem>>, vector<1x128xf32>
      %15 = vector.broadcast %14 : vector<1x128xf32> to vector<16x128xf32>
      %16 = arith.addf %13, %15 : vector<16x128xf32>
      %cst_10 = arith.constant 0.000000e+00 : f32
      %17 = vector.broadcast %cst_10 : f32 to vector<16x128xf32>
      %18 = arith.maximumf %16, %17 : vector<16x128xf32>
      %c0_11 = arith.constant 0 : index
      %c0_12 = arith.constant 0 : index
      %19 = vector.load %arg7[%c0_11, %c0_12] : memref<16x128xf32, #tpu.memory_space<vmem>>, vector<16x128xf32>
      tpu.vector_store %arg7[%c0_11, %c0_12], %18 {strides = array<i32>} : memref<16x128xf32, #tpu.memory_space<vmem>>, vector<16x128xf32>,
    } else {
    }
    return
  }
  func.func @transform_0(%arg0: i32, %arg1: i32) -> (i32, i32) {
    %c0_i32 = arith.constant 0 : i32
    %c0_i32_0 = arith.constant 0 : i32
    return %arg0, %c0_i32 : i32, i32
  }
  func.func @transform_1(%arg0: i32, %arg1: i32) -> (i32, i32, i32) {
    %c0_i32 = arith.constant 0 : i32
    %0 = arith.minsi %arg1, %c0_i32 : i32
    %c0_i32_0 = arith.constant 0 : i32
    %c0_i32_1 = arith.constant 0 : i32
    %c0_i32_2 = arith.constant 0 : i32
    return %0, %c0_i32_0, %c0_i32_1 : i32, i32, i32
  }
  func.func @transform_2(%arg0: i32, %arg1: i32) -> (i32, i32, i32) {
    %c0_i32 = arith.constant 0 : i32
    %c0_i32_0 = arith.constant 0 : i32
    %c0_i32_1 = arith.constant 0 : i32
    %c0_i32_2 = arith.constant 0 : i32
    return %c0_i32, %c0_i32_0, %c0_i32_1 : i32, i32, i32
  }
  func.func @transform_3(%arg0: i32, %arg1: i32) -> (i32, i32) {
    %c0_i32 = arith.constant 0 : i32
    %c0_i32_0 = arith.constant 0 : i32
    %c0_i32_1 = arith.constant 0 : i32
    return %c0_i32, %c0_i32_0 : i32, i32
  }
  func.func @transform_4(%arg0: i32, %arg1: i32) -> (i32, i32) {
    %c0_i32 = arith.constant 0 : i32
    %c0_i32_0 = arith.constant 0 : i32
    %c0_i32_1 = arith.constant 0 : i32
    return %c0_i32, %c0_i32_0 : i32, i32
  }
  func.func @transform_5(%arg0: i32, %arg1: i32) -> (i32, i32) {
    %c0_i32 = arith.constant 0 : i32
    %c0_i32_0 = arith.constant 0 : i32
    return %arg0, %c0_i32 : i32, i32
  }
}

</mosaic_0001>

<bundles_post_ra>
// kernel: _mlp_forward.1
= control target key start
LH: loop header
LB: loop body
LE: loop exit
PB: predicated region body
PF: predicated region fallthrough
CT: control target
= control target key end

     0   :  { %10 = vsyncpa [#allocation4], 0  ;;  %s1220_s0 = inlined_call_operand.vmem [shape: bf16[16,128], index: 0, kind: input, shape index: {}]   ;;  %s1221_s1 = inlined_call_operand.hbm [shape: bf16[1,128,128], index: 1, kind: input, shape index: {}]   ;;  %s1222_s2 = inlined_call_operand.vmem [shape: f32[1,1,128], index: 2, kind: input, shape index: {}]   ;;  %s1223_s3 = inlined_call_operand.hbm [shape: bf16[128,128], index: 3, kind: input, shape index: {}]   ;;  %s1224_s4 = inlined_call_operand.vmem [shape: f32[1,128], index: 4, kind: input, shape index: {}]   ;;  %s1225_s5 = inlined_call_operand.vmem [shape: f32[16,128], index: 5, kind: output, shape index: {}]  }
   0x1   :  { %12 = vsyncpa [#allocation4 + $0x1], 0 }
   0x2   :  { %13 = vsyncpa [#allocation6], 0  ;;  %s1088_s18 = smov 0   ;;  %s1090_s19 = smov 0  }
   0x3   :  { %s1092_s20 = smov 0   ;;  %s1094_s21 = smov 0  }
   0x4   :  { %s1096_s22 = smov 0  }
   0x5 LB: > { %s707_s23 = sadd.s32 4294967295, %s1052_s22   ;;  %p81_p0 = scmp.ne.s32.totalorder %s1040_s19, %s1036_s18  ;;  %s1052_s22 = sphi %s1096_s22, %s19_s22   ;;  %s1048_s21 = sphi %s1094_s21, %s1231_s21   ;;  %s1044_s20 = sphi %s1092_s20, %s1230_s20   ;;  %s1040_s19 = sphi %s1090_s19, %s1210_s19   ;;  %s1036_s18 = sphi %s1088_s18, %s1229_s18  }
   0x6   : > { %p1113_p1 = scmp.eq.s32.totalorder %s707_s23, 0  ;;  %p708_p2 = scmp.ge.s32.totalorder %s1052_s22, 1 }
   0x7   : > { %p181_p3 = scmp.lt.s32.totalorder %s1052_s22, 3  ;;  %s204_s28 = sshll.u32 %s1223_s3, 4  ;;  %s205_s28 = int_to_ptr.hbm [resolvable:$true] %s204_s28 }
   0x8   : > { %p1121_p4 = por %p1113_p1, %p81_p0  ;;  %s1054_s30 = smov [#allocation5]  }
   0x9   : > { %p1128_p5 = pnand %p708_p2, %p181_p3  ;;  %s206_s6 = sshll.u32 %s1054_s30, 4  ;;  %s207_s6 = int_to_ptr.vmem [resolvable:$true] %s206_s6 }
   0xa   : > { %s1055_s7 = smov 64   ;;  %s1056_s8 = smov 4  }
   0xb   : > { %p876_p6 = pneg %p1128_p5  ;;  %s28_s9 = sadd.s32 1, %s1048_s21 }
   0xc   : > { %p29_p8 = scmp.ge.s32.totalorder %s28_s9, 2  ;;  %p1033_p9 = scmp.ne.s32.totalorder %s1040_s19, 0 }
   0xd   : > { %p877_p7 = pnand %p876_p6, %p1113_p1  ;;  %p76_p10 = scmp.eq.s32.totalorder %s1052_s22, 0 }
   0xe   : > { %s1233_s9 = smov (%p29_p8, %s28_s9), 0  ;;  %p885_p11 = scmp.lt.s32.totalorder %s1052_s22, 2 }
   0xf   : > { %879 = dma.hbm_to_vmem [thread:$0]  (!%p877_p7), %s205_s28, 1024, %s207_s6, [#allocation6], %s1055_s7, %s1055_s7, %s1056_s8  }
  0x10   : > { %p77_p12 = por %p1033_p9, %p76_p10  ;;  %s1057_s10 = smov [#allocation3]  }
  0x11   : > { %s237_s11 = sshll.u32 %s1057_s10, 4  ;;  %s235_s14 = sshll.u32 %s1221_s1, 4  ;;  %s238_s11 = int_to_ptr.vmem [resolvable:$true] %s237_s11  ;;  %s236_s14 = int_to_ptr.hbm [resolvable:$true] %s235_s14 }
  0x12   : > { %p881_p13 = pnand %p885_p11, %p77_p12  ;;  %s971_s15 = sshra.s32 %s236_s14, 4  ;;  %s972_s15 = int_to_ptr.hbm [resolvable:$true] %s971_s15 }
  0x13   : > { %s973_s16 = scalar_lea.hbm %s972_s15, 64  ;;  %s978_s23 = scalar_lea.hbm %s1221_s1, 64 }
  0x14   : > { %p974_p0 = scmp.ne.s32.totalorder %s972_s15, %s973_s16  ;;  %p975_p2 = pneg %p881_p13 }
  0x15   : > { %p980_p7 = scmp.lt.s32.totalorder %s978_s23, %s973_s16 }
  0x16   : > { %p976_p3 = pnand %p975_p2, %p974_p0 }
  0x18   : > { %p977_p6 = pneg %p976_p3 }
  0x1a   : > { %p982_p8 = pnand %p980_p7, %p977_p6 }
  0x1c   : > { %985 = shalt.err (!%p982_p8)
}
  0x1d   : > { %883 = dma.hbm_to_vmem [thread:$0]  (!%p881_p13), %s236_s14, 1024, %s238_s11, [#allocation4], %s1055_s7, %s1055_s7, %s1056_s8  }
  0x1e   : > { %249 = sbr.rel (%p1128_p5) target bundleno = 578 (0x242), region = 40  ;;  %s251_s26 = sand.u32 (!%p1128_p5), 1, %s1040_s19  }
  0x1f   : > { %s716_s27 = sshll.u32 (!%p1128_p5), %s251_s26, 6  ;;  %s252_s28 = scalar_lea.sflag (!%p1128_p5), [#allocation4], %s251_s26 }
  0x20   : > { %s1157_s30 = scalar_lea.vmem (!%p1128_p5), [#allocation3], %s716_s27 }
  0x23   : > { %1026 = dma.done.wait (%p1121_p4), %s252_s28, 1024  }
  0x24   : > { %1028 = vsyncadd (%p1121_p4), %s252_s28, 4294966272 }
  0x25   : > { %1030 = dma.done.wait (%p1113_p1), [#allocation6], 1024  }
  0x26   : > { %1032 = vsyncadd (%p1113_p1), [#allocation6], 4294966272  ;;  %p718_p5 = scmp.ne.s32.totalorder %s1044_s20, 0 }
  0x28   : > { %310 = sbr.rel (%p718_p5) target bundleno = 218 (0xda), region = 52 }
  0x2d   : > { %v841_v0 = vld [vmem:[%s1157_s30 + $0x38] sm:$0xff]  ;;  %v840_v1 = vld [vmem:[%s1157_s30 + $0x30] sm:$0xff]  ;;  %v839_v2 = vld [vmem:[%s1157_s30 + $0x28] sm:$0xff] }
  0x2e   : > { %387 = vmatpush.bf16.msra.mxu0 %v841_v0  ;;  %v838_v3 = vld [vmem:[%s1157_s30 + $0x20] sm:$0xff]  ;;  %v837_v4 = vld [vmem:[%s1157_s30 + $0x18] sm:$0xff]  ;;  %v836_v5 = vld [vmem:[%s1157_s30 + $0x10] sm:$0xff] }
  0x2f   : > { %v835_v6 = vld [vmem:[%s1157_s30 + $0x8] sm:$0xff]  ;;  %v834_v7 = vld [vmem:[%s1157_s30] sm:$0xff]  ;;  %v833_v8 = vld [vmem:[%s1220_s0] sm:$0xff] }
  0x30   : > { %v938_v10 = vld [vmem:[%s1222_s2] ss:$0 sm:$0xff] }
  0x32   : > { %388 = vmatpush.bf16.msra.mxu0 %v840_v1 }
  0x36   : > { %389 = vmatpush.bf16.msra.mxu0 %v839_v2 }
  0x3a   : > { %390 = vmatpush.bf16.msra.mxu0 %v838_v3 }
  0x3e   : > { %391 = vmatpush.bf16.msra.mxu0 %v837_v4 }
  0x42   : > { %392 = vmatpush.bf16.msra.mxu0 %v836_v5 }
  0x46   : > { %393 = vmatpush.bf16.msra.mxu0 %v835_v6 }
  0x4a   : > { %394 = vmatpush.bf16.msra.mxu0 %v834_v7 }
  0x4d   : > { %395 = vmatmul.bf16.vlgmr.msra.gmra.mxu0 %v833_v8 }
  0xca   : > { %v396_v9 = vpop.f32.mrf.mxu0 }
  0xcb   : > { %v397_v11 = vadd.f32 %v938_v10, %v396_v9 }
  0xcd   : > { %v401_v14 = vmax.f32 %v397_v11, 0.0 }
  0xd2   : > { %v398_v12 = vpop.f32.mrf.mxu0 }
  0xd3   : > { %v399_v13 = vadd.f32 %v938_v10, %v398_v12 }
  0xd5   : > { %v402_v15 = vmax.f32 %v399_v13, 0.0 }
  0xd7   : > { %v863_v16 = vpack.c.bf16 %v402_v15, %v401_v14 }
  0xd9   : > { %864 = vst [vmem:[#allocation2] sm:$0xff] %v863_v16  }
  0xda PF: > { %p407_p1 = scmp.gt.s32.totalorder %s1044_s20, 0  ;;  %p408_p4 = scmp.lt.s32.totalorder %s1044_s20, 1 }
  0xdc   : > { %p409_p9 = pnand %p408_p4, %p407_p1 }
  0xdd   : > { %s431_s10 = scalar_lea.vmem (!%p409_p9), %s1222_s2, %s1044_s20 }
  0xde   : > { %412 = sbr.rel (%p409_p9) target bundleno = 400 (0x190), region = 56 }
  0xe3   : > { %v850_v17 = vld [vmem:[%s1157_s30 + $0x38] sm:$0xff]  ;;  %v849_v18 = vld [vmem:[%s1157_s30 + $0x30] sm:$0xff]  ;;  %v848_v19 = vld [vmem:[%s1157_s30 + $0x28] sm:$0xff] }
  0xe4   : > { %490 = vmatpush.bf16.msra.mxu0 %v850_v17  ;;  %v847_v20 = vld [vmem:[%s1157_s30 + $0x20] sm:$0xff]  ;;  %v846_v21 = vld [vmem:[%s1157_s30 + $0x18] sm:$0xff]  ;;  %v845_v22 = vld [vmem:[%s1157_s30 + $0x10] sm:$0xff] }
  0xe5   : > { %v844_v23 = vld [vmem:[%s1157_s30 + $0x8] sm:$0xff]  ;;  %v843_v24 = vld [vmem:[%s1157_s30] sm:$0xff]  ;;  %v842_v25 = vld [vmem:[#allocation2] sm:$0xff] }
  0xe6   : > { %v939_v27 = vld [vmem:[%s431_s10] ss:$0 sm:$0xff] }
  0xe8   : > { %491 = vmatpush.bf16.msra.mxu0 %v849_v18 }
  0xec   : > { %492 = vmatpush.bf16.msra.mxu0 %v848_v19 }
  0xf0   : > { %493 = vmatpush.bf16.msra.mxu0 %v847_v20 }
  0xf4   : > { %494 = vmatpush.bf16.msra.mxu0 %v846_v21 }
  0xf8   : > { %495 = vmatpush.bf16.msra.mxu0 %v845_v22 }
  0xfc   : > { %496 = vmatpush.bf16.msra.mxu0 %v844_v23 }
 0x100   : > { %497 = vmatpush.bf16.msra.mxu0 %v843_v24 }
 0x103   : > { %498 = vmatmul.bf16.vlgmr.msra.gmra.mxu0 %v842_v25 }
 0x180   : > { %v499_v26 = vpop.f32.mrf.mxu0 }
 0x181   : > { %v500_v28 = vadd.f32 %v939_v27, %v499_v26 }
 0x183   : > { %v504_v31 = vmax.f32 %v500_v28, 0.0 }
 0x188   : > { %v501_v29 = vpop.f32.mrf.mxu0 }
 0x189   : > { %v502_v30 = vadd.f32 %v939_v27, %v501_v29 }
 0x18b   : > { %v505_v32 = vmax.f32 %v502_v30, 0.0 }
 0x18d   : > { %v868_v33 = vpack.c.bf16 %v505_v32, %v504_v31 }
 0x18f   : > { %869 = vst [vmem:[#allocation2] sm:$0xff] %v868_v33  }
 0x190 PF: > { %p791_p10 = scmp.ne.s32.totalorder %s1044_s20, 1 }
 0x192   : > { %513 = sbr.rel (%p791_p10) target bundleno = 578 (0x242), region = 60 }
 0x197   : > { %v859_v34 = vld [vmem:[#allocation5 + $0x38] sm:$0xff]  ;;  %v858_v35 = vld [vmem:[#allocation5 + $0x30] sm:$0xff]  ;;  %v857_v36 = vld [vmem:[#allocation5 + $0x28] sm:$0xff] }
 0x198   : > { %590 = vmatpush.bf16.msra.mxu0 %v859_v34  ;;  %v856_v37 = vld [vmem:[#allocation5 + $0x20] sm:$0xff]  ;;  %v855_v38 = vld [vmem:[#allocation5 + $0x18] sm:$0xff]  ;;  %v854_v39 = vld [vmem:[#allocation5 + $0x10] sm:$0xff] }
 0x199   : > { %v853_v40 = vld [vmem:[#allocation5 + $0x8] sm:$0xff]  ;;  %v852_v41 = vld [vmem:[#allocation5] sm:$0xff]  ;;  %v851_v42 = vld [vmem:[#allocation2] sm:$0xff] }
 0x19a   : > { %v940_v43 = vld [vmem:[%s1224_s4] ss:$0 sm:$0xff] }
 0x19c   : > { %591 = vmatpush.bf16.msra.mxu0 %v858_v35 }
 0x1a0   : > { %592 = vmatpush.bf16.msra.mxu0 %v857_v36 }
 0x1a4   : > { %593 = vmatpush.bf16.msra.mxu0 %v856_v37 }
 0x1a8   : > { %594 = vmatpush.bf16.msra.mxu0 %v855_v38 }
 0x1ac   : > { %595 = vmatpush.bf16.msra.mxu0 %v854_v39 }
 0x1b0   : > { %596 = vmatpush.bf16.msra.mxu0 %v853_v40 }
 0x1b4   : > { %597 = vmatpush.bf16.msra.mxu0 %v852_v41 }
 0x1b7   : > { %598 = vmatmul.bf16.vlgmr.msra.gmra.mxu0 %v851_v42 }
 0x234   : > { %v599_v44 = vpop.f32.mrf.mxu0 }
 0x235   : > { %v600_v45 = vadd.f32 %v940_v43, %v599_v44 }
 0x237   : > { %v604_v46 = vmax.f32 %v600_v45, 0.0 }
 0x239   : > { %606 = vst [vmem:[%s1225_s5] sm:$0xff] %v604_v46 }
 0x23c   : > { %v601_v47 = vpop.f32.mrf.mxu0 }
 0x23d   : > { %v602_v48 = vadd.f32 %v940_v43, %v601_v47 }
 0x23f   : > { %v605_v49 = vmax.f32 %v602_v48, 0.0 }
 0x241   : > { %607 = vst [vmem:[%s1225_s5 + $0x8] sm:$0xff] %v605_v49 }
 0x242 PF: > { %s19_s22 = sadd.s32 1, %s1052_s22   ;;  %s1229_s18 = smov %s1040_s19 }
 0x243   : > { %p16_p11 = scmp.ge.s32.totalorder %s19_s22, 4   ;;  %s1210_s19 = smov 0  }
 0x244   : > { %s1230_s20 = smov %s1048_s21  ;;  %s1231_s21 = smov %s1233_s9 }
 0x245   :  { %18 = sbr.rel (!%p16_p11) target bundleno = 5 (0x5), region = 100 }
 0x24a   :  { %630 = vsyncpa [#allocation4], 1 }
 0x24b   :  { %632 = vsyncpa [#allocation4 + $0x1], 1 }
 0x24c   :  { %633 = vsyncpa [#allocation6], 1 }

</bundles_post_ra>
